<compile_context>
chip_gen: v7x
topology: tpu7x:2x2x1
jax: 0.10.0
libtpu: 0.0.40
codegen_flags: <defaults>
</compile_context>

<pallas_src>
import numpy as np
import jax
import jax.numpy as jnp
from jax.experimental import pallas as pl
from jax.experimental.pallas import tpu as pltpu


def _lstm_bwd_kernel(x_ref, wih_ref, whh_ref, b_ref, out_ref):
    # x_ref:   (T*Bp, D)  time-major flattened, batch padded to Bp (mult. of 8)
    # wih_ref: (D, 4H)    input->gates weights, cols [i, f, o, g], g cols *2
    # whh_ref: (H, 4H)    hidden->gates weights, same layout
    # b_ref:   (1, 4H)    combined bias (b_ih + b_hh), same layout
    # out_ref: (Bp, H)    final backward-direction hidden state (padded rows junk)
    TBp, _ = x_ref.shape
    H = whh_ref.shape[0]
    Bp = out_ref.shape[0]
    T = TBp // Bp

    whh = whh_ref[...]

    # Hoisted input projection: one (T*Bp, D) x (D, 4H) MXU matmul + bias.
    # No recurrent dependency -> runs once, off the critical path.
    gates_x = jnp.dot(x_ref[...], wih_ref[...],
                      preferred_element_type=jnp.float32) + b_ref[...]

    h = jnp.zeros((Bp, H), jnp.float32)
    c = jnp.zeros((Bp, H), jnp.float32)

    # Backward direction: t = T-1 .. 0.  Fully unrolled (T static & small) so
    # independent gate math can overlap the dependent h @ W_hh matmuls.
    for t in range(T - 1, -1, -1):
        gates = gates_x[t * Bp:(t + 1) * Bp, :] + jnp.dot(
            h, whh, preferred_element_type=jnp.float32)
        s = jax.nn.sigmoid(gates)            # one full-vreg EUP pass, all 128 lanes
        i = s[:, 0 * H:1 * H]
        f = s[:, 1 * H:2 * H]
        o = s[:, 2 * H:3 * H]
        g = 2.0 * s[:, 3 * H:4 * H] - 1.0    # tanh(x) = 2*sigmoid(2x)-1; 2x via weight prescale
        c = f * c + i * g
        h = o * jnp.tanh(c)

    out_ref[...] = h


def prepare_params(params):
    """One-time preprocessing of the backward-direction parameters into the
    kernel layout: gate columns reordered PyTorch [i, f, g, o] -> [i, f, o, g]
    and the g-gate columns pre-scaled by 2 (for the sigmoid-only gate pass).
    Call once; do NOT call per forward."""
    def reorder_prescale(w):
        i_, f_, g_, o_ = jnp.split(w, 4, axis=-1)
        return jnp.concatenate([i_, f_, o_, 2.0 * g_], axis=-1)

    return {
        "wih_b": reorder_prescale(params["wih_b"]),
        "whh_b": reorder_prescale(params["whh_b"]),
        "b_b": reorder_prescale(params["b_b"]),
    }


def bilstm_hidden(x_btd, kparams):
    """x_btd: (B, T, D) float32 (PyTorch batch_first layout).
    kparams: output of prepare_params().
    Returns hidden[-1] == backward-direction final hidden state, shape (B, H)."""
    B, T, D = x_btd.shape
    H = kparams["whh_b"].shape[0]

    # Pad batch to a full sublane group so every per-step tile is (8, 128)-aligned.
    Bp = max(8, pl.cdiv(B, 8) * 8)
    x_pad = jnp.pad(x_btd, ((0, Bp - B), (0, 0), (0, 0)))

    # Time-major flatten so the hoisted projection is a single big matmul.
    x_flat = jnp.transpose(x_pad, (1, 0, 2)).reshape(T * Bp, D)

    vmem = pl.BlockSpec(memory_space=pltpu.MemorySpace.VMEM)
    out = pl.pallas_call(
        _lstm_bwd_kernel,
        out_shape=jax.ShapeDtypeStruct((Bp, H), jnp.float32),
        in_specs=[vmem] * 4,
        out_specs=vmem,
    )(x_flat, kparams["wih_b"], kparams["whh_b"], kparams["b_b"])
    return out[:B]


def init_params(key, input_size, hidden_size):
    """Deterministic init mimicking PyTorch's U(-1/sqrt(H), 1/sqrt(H)).
    Keeps the full bidirectional parameter set for module fidelity even though
    only the backward-direction parameters influence the output.  Layout is
    PyTorch gate order [i, f, g, o]; weights stored transposed (D, 4H)."""
    H = hidden_size
    bound = 1.0 / np.sqrt(H)
    keys = jax.random.split(key, 8)

    def u(k, shape):
        return jax.random.uniform(k, shape, jnp.float32, -bound, bound)

    params = {
        "wih_f": u(keys[0], (input_size, 4 * H)),
        "whh_f": u(keys[1], (H, 4 * H)),
        "b_f": (u(keys[2], (1, 4 * H)) + u(keys[3], (1, 4 * H))),  # b_ih + b_hh
        "wih_b": u(keys[4], (input_size, 4 * H)),
        "whh_b": u(keys[5], (H, 4 * H)),
        "b_b": (u(keys[6], (1, 4 * H)) + u(keys[7], (1, 4 * H))),
    }
    return params


def _reference_bilstm_hidden(x_btd, params):
    """Pure-JAX reference (PyTorch gate order, raw params) of hidden[-1]."""
    H = params["whh_b"].shape[0]
    B = x_btd.shape[0]

    def cell(x_t, h, c, wih, whh, b):
        gates = x_t @ wih + h @ whh + b
        i = jax.nn.sigmoid(gates[:, 0 * H:1 * H])
        f = jax.nn.sigmoid(gates[:, 1 * H:2 * H])
        g = jnp.tanh(gates[:, 2 * H:3 * H])
        o = jax.nn.sigmoid(gates[:, 3 * H:4 * H])
        c = f * c + i * g
        h = o * jnp.tanh(c)
        return h, c

    h = jnp.zeros((B, H), jnp.float32)
    c = jnp.zeros((B, H), jnp.float32)
    # hidden[-1] is the backward direction's final h: iterate t = T-1 .. 0.
    for t in range(x_btd.shape[1] - 1, -1, -1):
        h, c = cell(x_btd[:, t, :], h, c,
                    params["wih_b"], params["whh_b"], params["b_b"])
    return h


if __name__ == "__main__":
    INPUT_SIZE = 256   # fixed by the module
    HIDDEN = 32
    B, T = 2, 8

    key = jax.random.PRNGKey(0)
    k_x, k_p = jax.random.split(key)
    x = jax.random.normal(k_x, (B, T, INPUT_SIZE), jnp.float32)
    params = init_params(k_p, INPUT_SIZE, HIDDEN)

    # One-time weight preprocessing (reorder + g-gate prescale); not per call.
    kparams = prepare_params(params)

    out = bilstm_hidden(x, kparams)
    out = jax.block_until_ready(out)

    ref = _reference_bilstm_hidden(x, params)
    assert out.shape == (B, HIDDEN)
    np.testing.assert_allclose(np.asarray(out), np.asarray(ref),
                               rtol=1e-5, atol=1e-5)
    print("KERNEL_OK")
</pallas_src>

<mosaic_0001>
module attributes {stable_mosaic.version = 11 : i64} {
  func.func @_lstm_bwd_kernel(%arg0: memref<64x256xf32, #tpu.memory_space<vmem>>, %arg1: memref<256x128xf32, #tpu.memory_space<vmem>>, %arg2: memref<32x128xf32, #tpu.memory_space<vmem>>, %arg3: memref<1x128xf32, #tpu.memory_space<vmem>>, %arg4: memref<8x32xf32, #tpu.memory_space<vmem>>) attributes {dimension_semantics = [], scalar_prefetch = 0 : i64, scratch_operands = 0 : i64, tpu.core_type = #tpu.core_type<tc>} {
    %c0 = arith.constant 0 : index
    %c0_0 = arith.constant 0 : index
    %0 = vector.load %arg2[%c0, %c0_0] : memref<32x128xf32, #tpu.memory_space<vmem>>, vector<32x128xf32>
    %c0_1 = arith.constant 0 : index
    %c0_2 = arith.constant 0 : index
    %1 = vector.load %arg0[%c0_1, %c0_2] : memref<64x256xf32, #tpu.memory_space<vmem>>, vector<64x256xf32>
    %c0_3 = arith.constant 0 : index
    %c0_4 = arith.constant 0 : index
    %2 = vector.load %arg1[%c0_3, %c0_4] : memref<256x128xf32, #tpu.memory_space<vmem>>, vector<256x128xf32>
    %cst = arith.constant dense<0.000000e+00> : vector<64x128xf32>
    %3 = tpu.matmul %1, %2, %cst {dimension_numbers = #tpu.dot_dimension_numbers<[1], [0], [0], [1], [0, 0, 1, 1], [], []>} : vector<64x256xf32>, vector<256x128xf32>, vector<64x128xf32> -> vector<64x128xf32>
    %c0_5 = arith.constant 0 : index
    %c0_6 = arith.constant 0 : index
    %4 = vector.load %arg3[%c0_5, %c0_6] : memref<1x128xf32, #tpu.memory_space<vmem>>, vector<1x128xf32>
    %5 = vector.broadcast %4 : vector<1x128xf32> to vector<64x128xf32>
    %6 = arith.addf %3, %5 : vector<64x128xf32>
    %cst_7 = arith.constant 0.000000e+00 : f32
    %7 = vector.broadcast %cst_7 : f32 to vector<8x32xf32>
    %cst_8 = arith.constant 0.000000e+00 : f32
    %8 = vector.broadcast %cst_8 : f32 to vector<8x32xf32>
    %9 = vector.extract_strided_slice %6 {offsets = [56, 0], sizes = [8, 128], strides = [1, 1]} : vector<64x128xf32> to vector<8x128xf32>
    %cst_9 = arith.constant dense<0.000000e+00> : vector<8x128xf32>
    %10 = tpu.matmul %7, %0, %cst_9 {dimension_numbers = #tpu.dot_dimension_numbers<[1], [0], [0], [1], [0, 0, 1, 1], [], []>} : vector<8x32xf32>, vector<32x128xf32>, vector<8x128xf32> -> vector<8x128xf32>
    %11 = arith.addf %9, %10 : vector<8x128xf32>
    %12 = arith.negf %11 : vector<8x128xf32>
    %13 = math.exp %12 : vector<8x128xf32>
    %cst_10 = arith.constant 1.000000e+00 : f32
    %14 = vector.broadcast %cst_10 : f32 to vector<8x128xf32>
    %15 = arith.addf %14, %13 : vector<8x128xf32>
    %16 = arith.divf %14, %15 : vector<8x128xf32>
    %17 = vector.extract_strided_slice %16 {offsets = [0, 0], sizes = [8, 32], strides = [1, 1]} : vector<8x128xf32> to vector<8x32xf32>
    %18 = vector.extract_strided_slice %16 {offsets = [0, 32], sizes = [8, 32], strides = [1, 1]} : vector<8x128xf32> to vector<8x32xf32>
    %19 = vector.extract_strided_slice %16 {offsets = [0, 64], sizes = [8, 32], strides = [1, 1]} : vector<8x128xf32> to vector<8x32xf32>
    %20 = vector.extract_strided_slice %16 {offsets = [0, 96], sizes = [8, 32], strides = [1, 1]} : vector<8x128xf32> to vector<8x32xf32>
    %cst_11 = arith.constant 2.000000e+00 : f32
    %21 = vector.broadcast %cst_11 : f32 to vector<8x32xf32>
    %22 = arith.mulf %21, %20 : vector<8x32xf32>
    %cst_12 = arith.constant 1.000000e+00 : f32
    %23 = vector.broadcast %cst_12 : f32 to vector<8x32xf32>
    %24 = arith.subf %22, %23 : vector<8x32xf32>
    %25 = arith.mulf %18, %8 : vector<8x32xf32>
    %26 = arith.mulf %17, %24 : vector<8x32xf32>
    %27 = arith.addf %25, %26 : vector<8x32xf32>
    %28 = math.tanh %27 : vector<8x32xf32>
    %29 = arith.mulf %19, %28 : vector<8x32xf32>
    %30 = vector.extract_strided_slice %6 {offsets = [48, 0], sizes = [8, 128], strides = [1, 1]} : vector<64x128xf32> to vector<8x128xf32>
    %cst_13 = arith.constant dense<0.000000e+00> : vector<8x128xf32>
    %31 = tpu.matmul %29, %0, %cst_13 {dimension_numbers = #tpu.dot_dimension_numbers<[1], [0], [0], [1], [0, 0, 1, 1], [], []>} : vector<8x32xf32>, vector<32x128xf32>, vector<8x128xf32> -> vector<8x128xf32>
    %32 = arith.addf %30, %31 : vector<8x128xf32>
    %33 = arith.negf %32 : vector<8x128xf32>
    %34 = math.exp %33 : vector<8x128xf32>
    %cst_14 = arith.constant 1.000000e+00 : f32
    %35 = vector.broadcast %cst_14 : f32 to vector<8x128xf32>
    %36 = arith.addf %35, %34 : vector<8x128xf32>
    %37 = arith.divf %35, %36 : vector<8x128xf32>
    %38 = vector.extract_strided_slice %37 {offsets = [0, 0], sizes = [8, 32], strides = [1, 1]} : vector<8x128xf32> to vector<8x32xf32>
    %39 = vector.extract_strided_slice %37 {offsets = [0, 32], sizes = [8, 32], strides = [1, 1]} : vector<8x128xf32> to vector<8x32xf32>
    %40 = vector.extract_strided_slice %37 {offsets = [0, 64], sizes = [8, 32], strides = [1, 1]} : vector<8x128xf32> to vector<8x32xf32>
    %41 = vector.extract_strided_slice %37 {offsets = [0, 96], sizes = [8, 32], strides = [1, 1]} : vector<8x128xf32> to vector<8x32xf32>
    %cst_15 = arith.constant 2.000000e+00 : f32
    %42 = vector.broadcast %cst_15 : f32 to vector<8x32xf32>
    %43 = arith.mulf %42, %41 : vector<8x32xf32>
    %cst_16 = arith.constant 1.000000e+00 : f32
    %44 = vector.broadcast %cst_16 : f32 to vector<8x32xf32>
    %45 = arith.subf %43, %44 : vector<8x32xf32>
    %46 = arith.mulf %39, %27 : vector<8x32xf32>
    %47 = arith.mulf %38, %45 : vector<8x32xf32>
    %48 = arith.addf %46, %47 : vector<8x32xf32>
    %49 = math.tanh %48 : vector<8x32xf32>
    %50 = arith.mulf %40, %49 : vector<8x32xf32>
    %51 = vector.extract_strided_slice %6 {offsets = [40, 0], sizes = [8, 128], strides = [1, 1]} : vector<64x128xf32> to vector<8x128xf32>
    %cst_17 = arith.constant dense<0.000000e+00> : vector<8x128xf32>
    %52 = tpu.matmul %50, %0, %cst_17 {dimension_numbers = #tpu.dot_dimension_numbers<[1], [0], [0], [1], [0, 0, 1, 1], [], []>} : vector<8x32xf32>, vector<32x128xf32>, vector<8x128xf32> -> vector<8x128xf32>
    %53 = arith.addf %51, %52 : vector<8x128xf32>
    %54 = arith.negf %53 : vector<8x128xf32>
    %55 = math.exp %54 : vector<8x128xf32>
    %cst_18 = arith.constant 1.000000e+00 : f32
    %56 = vector.broadcast %cst_18 : f32 to vector<8x128xf32>
    %57 = arith.addf %56, %55 : vector<8x128xf32>
    %58 = arith.divf %56, %57 : vector<8x128xf32>
    %59 = vector.extract_strided_slice %58 {offsets = [0, 0], sizes = [8, 32], strides = [1, 1]} : vector<8x128xf32> to vector<8x32xf32>
    %60 = vector.extract_strided_slice %58 {offsets = [0, 32], sizes = [8, 32], strides = [1, 1]} : vector<8x128xf32> to vector<8x32xf32>
    %61 = vector.extract_strided_slice %58 {offsets = [0, 64], sizes = [8, 32], strides = [1, 1]} : vector<8x128xf32> to vector<8x32xf32>
    %62 = vector.extract_strided_slice %58 {offsets = [0, 96], sizes = [8, 32], strides = [1, 1]} : vector<8x128xf32> to vector<8x32xf32>
    %cst_19 = arith.constant 2.000000e+00 : f32
    %63 = vector.broadcast %cst_19 : f32 to vector<8x32xf32>
    %64 = arith.mulf %63, %62 : vector<8x32xf32>
    %cst_20 = arith.constant 1.000000e+00 : f32
    %65 = vector.broadcast %cst_20 : f32 to vector<8x32xf32>
    %66 = arith.subf %64, %65 : vector<8x32xf32>
    %67 = arith.mulf %60, %48 : vector<8x32xf32>
    %68 = arith.mulf %59, %66 : vector<8x32xf32>
    %69 = arith.addf %67, %68 : vector<8x32xf32>
    %70 = math.tanh %69 : vector<8x32xf32>
    %71 = arith.mulf %61, %70 : vector<8x32xf32>
    %72 = vector.extract_strided_slice %6 {offsets = [32, 0], sizes = [8, 128], strides = [1, 1]} : vector<64x128xf32> to vector<8x128xf32>
    %cst_21 = arith.constant dense<0.000000e+00> : vector<8x128xf32>
    %73 = tpu.matmul %71, %0, %cst_21 {dimension_numbers = #tpu.dot_dimension_numbers<[1], [0], [0], [1], [0, 0, 1, 1], [], []>} : vector<8x32xf32>, vector<32x128xf32>, vector<8x128xf32> -> vector<8x128xf32>
    %74 = arith.addf %72, %73 : vector<8x128xf32>
    %75 = arith.negf %74 : vector<8x128xf32>
    %76 = math.exp %75 : vector<8x128xf32>
    %cst_22 = arith.constant 1.000000e+00 : f32
    %77 = vector.broadcast %cst_22 : f32 to vector<8x128xf32>
    %78 = arith.addf %77, %76 : vector<8x128xf32>
    %79 = arith.divf %77, %78 : vector<8x128xf32>
    %80 = vector.extract_strided_slice %79 {offsets = [0, 0], sizes = [8, 32], strides = [1, 1]} : vector<8x128xf32> to vector<8x32xf32>
    %81 = vector.extract_strided_slice %79 {offsets = [0, 32], sizes = [8, 32], strides = [1, 1]} : vector<8x128xf32> to vector<8x32xf32>
    %82 = vector.extract_strided_slice %79 {offsets = [0, 64], sizes = [8, 32], strides = [1, 1]} : vector<8x128xf32> to vector<8x32xf32>
    %83 = vector.extract_strided_slice %79 {offsets = [0, 96], sizes = [8, 32], strides = [1, 1]} : vector<8x128xf32> to vector<8x32xf32>
    %cst_23 = arith.constant 2.000000e+00 : f32
    %84 = vector.broadcast %cst_23 : f32 to vector<8x32xf32>
    %85 = arith.mulf %84, %83 : vector<8x32xf32>
    %cst_24 = arith.constant 1.000000e+00 : f32
    %86 = vector.broadcast %cst_24 : f32 to vector<8x32xf32>
    %87 = arith.subf %85, %86 : vector<8x32xf32>
    %88 = arith.mulf %81, %69 : vector<8x32xf32>
    %89 = arith.mulf %80, %87 : vector<8x32xf32>
    %90 = arith.addf %88, %89 : vector<8x32xf32>
    %91 = math.tanh %90 : vector<8x32xf32>
    %92 = arith.mulf %82, %91 : vector<8x32xf32>
    %93 = vector.extract_strided_slice %6 {offsets = [24, 0], sizes = [8, 128], strides = [1, 1]} : vector<64x128xf32> to vector<8x128xf32>
    %cst_25 = arith.constant dense<0.000000e+00> : vector<8x128xf32>
    %94 = tpu.matmul %92, %0, %cst_25 {dimension_numbers = #tpu.dot_dimension_numbers<[1], [0], [0], [1], [0, 0, 1, 1], [], []>} : vector<8x32xf32>, vector<32x128xf32>, vector<8x128xf32> -> vector<8x128xf32>
    %95 = arith.addf %93, %94 : vector<8x128xf32>
    %96 = arith.negf %95 : vector<8x128xf32>
    %97 = math.exp %96 : vector<8x128xf32>
    %cst_26 = arith.constant 1.000000e+00 : f32
    %98 = vector.broadcast %cst_26 : f32 to vector<8x128xf32>
    %99 = arith.addf %98, %97 : vector<8x128xf32>
    %100 = arith.divf %98, %99 : vector<8x128xf32>
    %101 = vector.extract_strided_slice %100 {offsets = [0, 0], sizes = [8, 32], strides = [1, 1]} : vector<8x128xf32> to vector<8x32xf32>
    %102 = vector.extract_strided_slice %100 {offsets = [0, 32], sizes = [8, 32], strides = [1, 1]} : vector<8x128xf32> to vector<8x32xf32>
    %103 = vector.extract_strided_slice %100 {offsets = [0, 64], sizes = [8, 32], strides = [1, 1]} : vector<8x128xf32> to vector<8x32xf32>
    %104 = vector.extract_strided_slice %100 {offsets = [0, 96], sizes = [8, 32], strides = [1, 1]} : vector<8x128xf32> to vector<8x32xf32>
    %cst_27 = arith.constant 2.000000e+00 : f32
    %105 = vector.broadcast %cst_27 : f32 to vector<8x32xf32>
    %106 = arith.mulf %105, %104 : vector<8x32xf32>
    %cst_28 = arith.constant 1.000000e+00 : f32
    %107 = vector.broadcast %cst_28 : f32 to vector<8x32xf32>
    %108 = arith.subf %106, %107 : vector<8x32xf32>
    %109 = arith.mulf %102, %90 : vector<8x32xf32>
    %110 = arith.mulf %101, %108 : vector<8x32xf32>
    %111 = arith.addf %109, %110 : vector<8x32xf32>
    %112 = math.tanh %111 : vector<8x32xf32>
    %113 = arith.mulf %103, %112 : vector<8x32xf32>
    %114 = vector.extract_strided_slice %6 {offsets = [16, 0], sizes = [8, 128], strides = [1, 1]} : vector<64x128xf32> to vector<8x128xf32>
    %cst_29 = arith.constant dense<0.000000e+00> : vector<8x128xf32>
    %115 = tpu.matmul %113, %0, %cst_29 {dimension_numbers = #tpu.dot_dimension_numbers<[1], [0], [0], [1], [0, 0, 1, 1], [], []>} : vector<8x32xf32>, vector<32x128xf32>, vector<8x128xf32> -> vector<8x128xf32>
    %116 = arith.addf %114, %115 : vector<8x128xf32>
    %117 = arith.negf %116 : vector<8x128xf32>
    %118 = math.exp %117 : vector<8x128xf32>
    %cst_30 = arith.constant 1.000000e+00 : f32
    %119 = vector.broadcast %cst_30 : f32 to vector<8x128xf32>
    %120 = arith.addf %119, %118 : vector<8x128xf32>
    %121 = arith.divf %119, %120 : vector<8x128xf32>
    %122 = vector.extract_strided_slice %121 {offsets = [0, 0], sizes = [8, 32], strides = [1, 1]} : vector<8x128xf32> to vector<8x32xf32>
    %123 = vector.extract_strided_slice %121 {offsets = [0, 32], sizes = [8, 32], strides = [1, 1]} : vector<8x128xf32> to vector<8x32xf32>
    %124 = vector.extract_strided_slice %121 {offsets = [0, 64], sizes = [8, 32], strides = [1, 1]} : vector<8x128xf32> to vector<8x32xf32>
    %125 = vector.extract_strided_slice %121 {offsets = [0, 96], sizes = [8, 32], strides = [1, 1]} : vector<8x128xf32> to vector<8x32xf32>
    %cst_31 = arith.constant 2.000000e+00 : f32
    %126 = vector.broadcast %cst_31 : f32 to vector<8x32xf32>
    %127 = arith.mulf %126, %125 : vector<8x32xf32>
    %cst_32 = arith.constant 1.000000e+00 : f32
    %128 = vector.broadcast %cst_32 : f32 to vector<8x32xf32>
    %129 = arith.subf %127, %128 : vector<8x32xf32>
    %130 = arith.mulf %123, %111 : vector<8x32xf32>
    %131 = arith.mulf %122, %129 : vector<8x32xf32>
    %132 = arith.addf %130, %131 : vector<8x32xf32>
    %133 = math.tanh %132 : vector<8x32xf32>
    %134 = arith.mulf %124, %133 : vector<8x32xf32>
    %135 = vector.extract_strided_slice %6 {offsets = [8, 0], sizes = [8, 128], strides = [1, 1]} : vector<64x128xf32> to vector<8x128xf32>
    %cst_33 = arith.constant dense<0.000000e+00> : vector<8x128xf32>
    %136 = tpu.matmul %134, %0, %cst_33 {dimension_numbers = #tpu.dot_dimension_numbers<[1], [0], [0], [1], [0, 0, 1, 1], [], []>} : vector<8x32xf32>, vector<32x128xf32>, vector<8x128xf32> -> vector<8x128xf32>
    %137 = arith.addf %135, %136 : vector<8x128xf32>
    %138 = arith.negf %137 : vector<8x128xf32>
    %139 = math.exp %138 : vector<8x128xf32>
    %cst_34 = arith.constant 1.000000e+00 : f32
    %140 = vector.broadcast %cst_34 : f32 to vector<8x128xf32>
    %141 = arith.addf %140, %139 : vector<8x128xf32>
    %142 = arith.divf %140, %141 : vector<8x128xf32>
    %143 = vector.extract_strided_slice %142 {offsets = [0, 0], sizes = [8, 32], strides = [1, 1]} : vector<8x128xf32> to vector<8x32xf32>
    %144 = vector.extract_strided_slice %142 {offsets = [0, 32], sizes = [8, 32], strides = [1, 1]} : vector<8x128xf32> to vector<8x32xf32>
    %145 = vector.extract_strided_slice %142 {offsets = [0, 64], sizes = [8, 32], strides = [1, 1]} : vector<8x128xf32> to vector<8x32xf32>
    %146 = vector.extract_strided_slice %142 {offsets = [0, 96], sizes = [8, 32], strides = [1, 1]} : vector<8x128xf32> to vector<8x32xf32>
    %cst_35 = arith.constant 2.000000e+00 : f32
    %147 = vector.broadcast %cst_35 : f32 to vector<8x32xf32>
    %148 = arith.mulf %147, %146 : vector<8x32xf32>
    %cst_36 = arith.constant 1.000000e+00 : f32
    %149 = vector.broadcast %cst_36 : f32 to vector<8x32xf32>
    %150 = arith.subf %148, %149 : vector<8x32xf32>
    %151 = arith.mulf %144, %132 : vector<8x32xf32>
    %152 = arith.mulf %143, %150 : vector<8x32xf32>
    %153 = arith.addf %151, %152 : vector<8x32xf32>
    %154 = math.tanh %153 : vector<8x32xf32>
    %155 = arith.mulf %145, %154 : vector<8x32xf32>
    %156 = vector.extract_strided_slice %6 {offsets = [0, 0], sizes = [8, 128], strides = [1, 1]} : vector<64x128xf32> to vector<8x128xf32>
    %cst_37 = arith.constant dense<0.000000e+00> : vector<8x128xf32>
    %157 = tpu.matmul %155, %0, %cst_37 {dimension_numbers = #tpu.dot_dimension_numbers<[1], [0], [0], [1], [0, 0, 1, 1], [], []>} : vector<8x32xf32>, vector<32x128xf32>, vector<8x128xf32> -> vector<8x128xf32>
    %158 = arith.addf %156, %157 : vector<8x128xf32>
    %159 = arith.negf %158 : vector<8x128xf32>
    %160 = math.exp %159 : vector<8x128xf32>
    %cst_38 = arith.constant 1.000000e+00 : f32
    %161 = vector.broadcast %cst_38 : f32 to vector<8x128xf32>
    %162 = arith.addf %161, %160 : vector<8x128xf32>
    %163 = arith.divf %161, %162 : vector<8x128xf32>
    %164 = vector.extract_strided_slice %163 {offsets = [0, 0], sizes = [8, 32], strides = [1, 1]} : vector<8x128xf32> to vector<8x32xf32>
    %165 = vector.extract_strided_slice %163 {offsets = [0, 32], sizes = [8, 32], strides = [1, 1]} : vector<8x128xf32> to vector<8x32xf32>
    %166 = vector.extract_strided_slice %163 {offsets = [0, 64], sizes = [8, 32], strides = [1, 1]} : vector<8x128xf32> to vector<8x32xf32>
    %167 = vector.extract_strided_slice %163 {offsets = [0, 96], sizes = [8, 32], strides = [1, 1]} : vector<8x128xf32> to vector<8x32xf32>
    %cst_39 = arith.constant 2.000000e+00 : f32
    %168 = vector.broadcast %cst_39 : f32 to vector<8x32xf32>
    %169 = arith.mulf %168, %167 : vector<8x32xf32>
    %cst_40 = arith.constant 1.000000e+00 : f32
    %170 = vector.broadcast %cst_40 : f32 to vector<8x32xf32>
    %171 = arith.subf %169, %170 : vector<8x32xf32>
    %172 = arith.mulf %165, %153 : vector<8x32xf32>
    %173 = arith.mulf %164, %171 : vector<8x32xf32>
    %174 = arith.addf %172, %173 : vector<8x32xf32>
    %175 = math.tanh %174 : vector<8x32xf32>
    %176 = arith.mulf %166, %175 : vector<8x32xf32>
    %c0_41 = arith.constant 0 : index
    %c0_42 = arith.constant 0 : index
    %177 = vector.load %arg4[%c0_41, %c0_42] : memref<8x32xf32, #tpu.memory_space<vmem>>, vector<8x32xf32>
    tpu.vector_store %arg4[%c0_41, %c0_42], %176 {strides = array<i32>} : memref<8x32xf32, #tpu.memory_space<vmem>>, vector<8x32xf32>,
    return
  }
}

</mosaic_0001>

<bundles_post_ra>
// kernel: tpu_custom_call.1
= control target key start
LH: loop header
LB: loop body
LE: loop exit
PB: predicated region body
PF: predicated region fallthrough
CT: control target
= control target key end

     0   :  { %9 = vsyncpa [#allocation3], 0  ;;  %s1700_s0 = inlined_call_operand.hbm [shape: f32[64,256], index: 0, kind: input, shape index: {}]   ;;  %s1701_s1 = inlined_call_operand.hbm [shape: f32[256,128], index: 1, kind: input, shape index: {}]   ;;  %s1702_s2 = inlined_call_operand.hbm [shape: f32[32,128], index: 2, kind: input, shape index: {}]   ;;  %s1703_s3 = inlined_call_operand.vmem [shape: f32[1,128], index: 3, kind: input, shape index: {}]   ;;  %s1704_s4 = inlined_call_operand.hbm [shape: f32[8,32], index: 4, kind: output, shape index: {}]  }
   0x1   :  { %10 = vsyncpa [#allocation6], 0 }
   0x2   :  { %11 = vsyncpa [#allocation4], 0  ;;  %s1494_s15 = smov [#allocation5]   ;;  %s1400_s19 = scalar_lea.hbm %s1701_s1, 4096 }
   0x3   :  { %s29_s16 = sshll.u32 %s1494_s15, 4  ;;  %p1401_p0 = scmp.ne.s32.totalorder %s1701_s1, %s1400_s19  ;;  %s30_s16 = int_to_ptr.vmem [resolvable:$true] %s29_s16 }
   0x4   :  { %p1404_p1 = scmp.lt.u32.totalorder %s1400_s19, %s1701_s1 }
   0x6   :  { %p1406_p2 = pnand %p1404_p1, %p1401_p0 }
   0x8   :  { %1409 = shalt.err (!%p1406_p2)
}
   0x9   :  { %s1410_s24 = scalar_lea.vmem %s30_s16, 4096  ;;  %p1415_p4 = scmp.lt.s32.totalorder %s30_s16, %s30_s16 }
   0xa   :  { %p1411_p3 = scmp.ne.s32.totalorder %s30_s16, %s1410_s24  ;;  %p1416_p5 = scmp.lt.s32.totalorder %s1410_s24, %s1410_s24 }
   0xc   :  { %p1417_p6 = por %p1416_p5, %p1415_p4 }
   0xe   :  { %p1418_p7 = pnand %p1417_p6, %p1411_p3 }
  0x10   :  { %1421 = shalt.err (!%p1418_p7)
}
  0x11   :  { %s1495_s25 = smov 128   ;;  %s1496_s26 = smov 8  }
  0x12   :  { %35 = dma.hbm_to_vmem [thread:$0]  %s1701_s1, 4096, %s30_s16, [#allocation6], %s1495_s25, %s1495_s25, %s1496_s26  }
  0x13   :  { %s1497_s29 = smov [#allocation2]   ;;  %s1422_s7 = scalar_lea.hbm %s1700_s0, 2048 }
  0x14   :  { %s17_s30 = sshll.u32 %s1497_s29, 4  ;;  %p1423_p8 = scmp.ne.s32.totalorder %s1700_s0, %s1422_s7  ;;  %s18_s30 = int_to_ptr.vmem [resolvable:$true] %s17_s30 }
  0x15   :  { %p1426_p9 = scmp.lt.u32.totalorder %s1422_s7, %s1700_s0 }
  0x17   :  { %p1428_p10 = pnand %p1426_p9, %p1423_p8 }
  0x19   :  { %1431 = shalt.err (!%p1428_p10)
}
  0x1a   :  { %s1432_s12 = scalar_lea.vmem %s18_s30, 2048  ;;  %p1437_p12 = scmp.lt.s32.totalorder %s18_s30, %s18_s30 }
  0x1b   :  { %p1433_p11 = scmp.ne.s32.totalorder %s18_s30, %s1432_s12  ;;  %p1438_p13 = scmp.lt.s32.totalorder %s1432_s12, %s1432_s12 }
  0x1d   :  { %p1439_p0 = por %p1438_p13, %p1437_p12 }
  0x1f   :  { %p1440_p1 = pnand %p1439_p0, %p1433_p11 }
  0x21   :  { %1443 = shalt.err (!%p1440_p1)
}
  0x22   :  { %s1498_s1 = smov 256   ;;  %s1499_s13 = smov 16  }
  0x23   :  { %23 = dma.hbm_to_vmem [thread:$0]  %s1700_s0, 2048, %s18_s30, [#allocation3], %s1498_s1, %s1498_s1, %s1499_s13  }
  0x24   :  { %s1500_s16 = smov [#allocation7]   ;;  %s1444_s20 = scalar_lea.hbm %s1702_s2, 512 }
  0x25   :  { %s41_s17 = sshll.u32 %s1500_s16, 4  ;;  %p1445_p2 = scmp.ne.s32.totalorder %s1702_s2, %s1444_s20  ;;  %s42_s17 = int_to_ptr.vmem [resolvable:$true] %s41_s17 }
  0x26   :  { %p1448_p3 = scmp.lt.u32.totalorder %s1444_s20, %s1702_s2 }
  0x28   :  { %p1450_p4 = pnand %p1448_p3, %p1445_p2 }
  0x2a   :  { %1453 = shalt.err (!%p1450_p4)
}
  0x2b   :  { %s1454_s27 = scalar_lea.vmem %s42_s17, 512  ;;  %p1459_p6 = scmp.lt.s32.totalorder %s42_s17, %s42_s17 }
  0x2c   :  { %p1455_p5 = scmp.ne.s32.totalorder %s42_s17, %s1454_s27  ;;  %p1460_p7 = scmp.lt.s32.totalorder %s1454_s27, %s1454_s27 }
  0x2e   :  { %p1461_p8 = por %p1460_p7, %p1459_p6 }
  0x30   :  { %p1462_p9 = pnand %p1461_p8, %p1455_p5 }
  0x32   :  { %1465 = shalt.err (!%p1462_p9)
}
  0x33   :  { %47 = dma.hbm_to_vmem [thread:$0]  %s1702_s2, 512, %s42_s17, [#allocation6], %s1495_s25, %s1495_s25, %s1496_s26  }
  0x34   :  { %1488 = dma.done.wait [#allocation3], 2048  }
  0x35   :  { %1489 = vsyncadd [#allocation3], 4294965248 }
  0x36   :  { %1490 = dma.done.wait [#allocation6], 4608  }
  0x37   :  { %1491 = vsyncadd [#allocation6], 4294962688  ;;  %v1501_v0 = vmov 0.0|0.0   ;;  %vm1502_vm0 = vmmov 0   ;;  %v1503_v1 = vmov 0.0   ;;  %v95_v2 = vld [vmem:[#allocation5 + $0x80] sm:$0xff] }
  0x38   :  { %1291 = vmatprep.subr.bf16.mxu1 %v1501_v0  ;;  %1179 = vmatprep.mubr.msk.f32.mxu1 %vm1502_vm0, %v1503_v1  ;;  %v96_v3 = vld [vmem:[#allocation5 + $0x88] sm:$0xff]  ;;  %v79_v4 = vld [vmem:[#allocation5] sm:$0xff]  ;;  %v97_v7 = vld [vmem:[#allocation5 + $0x90] sm:$0xff]  ;;  %s1505_s26 = smov 64   ;;  %vm223_vm1 = vcmask 261120   ;;  %s1506_s29 = smov [#allocation8]  }
  0x39   :  { %v1259_v5 = vpack.c.bf16 %v96_v3, %v95_v2  ;;  %v80_v6 = vld [vmem:[#allocation5 + $0x8] sm:$0xff]  ;;  %v98_v8 = vld [vmem:[#allocation5 + $0x98] sm:$0xff]  ;;  %v81_v11 = vld [vmem:[#allocation5 + $0x10] sm:$0xff]  ;;  %s1041_s30 = sshll.u32 %s1506_s29, 4  ;;  %s1042_s30 = int_to_ptr.vmem [resolvable:$true] %s1041_s30 }
  0x3a   :  { %v1261_v9 = vpack.c.bf16 %v80_v6, %v79_v4  ;;  %v1263_v10 = vpack.c.bf16 %v98_v8, %v97_v7  ;;  %v82_v12 = vld [vmem:[#allocation5 + $0x18] sm:$0xff]  ;;  %v99_v13 = vld [vmem:[#allocation5 + $0xa0] sm:$0xff]  ;;  %v100_v14 = vld [vmem:[#allocation5 + $0xa8] sm:$0xff]  ;;  %s1466_s5 = scalar_lea.vmem %s1042_s30, 128  ;;  %p1471_p11 = scmp.lt.s32.totalorder %s1042_s30, %s1042_s30 }
  0x3b   :  { %1260 = vmatprep.subr.bf16.mxu0 %v1259_v5  ;;  %v1265_v15 = vpack.c.bf16 %v82_v12, %v81_v11  ;;  %v1267_v16 = vpack.c.bf16 %v100_v14, %v99_v13  ;;  %v83_v17 = vld [vmem:[#allocation5 + $0x20] sm:$0xff]  ;;  %v84_v18 = vld [vmem:[#allocation5 + $0x28] sm:$0xff]  ;;  %v101_v19 = vld [vmem:[#allocation5 + $0xb0] sm:$0xff]  ;;  %p1467_p10 = scmp.ne.s32.totalorder %s1042_s30, %s1466_s5  ;;  %p1472_p12 = scmp.lt.s32.totalorder %s1466_s5, %s1466_s5 }
  0x3c   :  { %1262 = vmatpush3.bf16.msra.mxu0 %v1261_v9  ;;  %v102_v20 = vld [vmem:[#allocation5 + $0xb8] sm:$0xff]  ;;  %v1269_v21 = vpack.c.bf16 %v84_v18, %v83_v17  ;;  %v85_v23 = vld [vmem:[#allocation5 + $0x30] sm:$0xff]  ;;  %v103_v25 = vld [vmem:[#allocation5 + $0xc0] sm:$0xff] }
  0x3d   :  { %1264 = vmatprep.subr.bf16.mxu0 %v1263_v10  ;;  %v1271_v22 = vpack.c.bf16 %v102_v20, %v101_v19  ;;  %v86_v24 = vld [vmem:[#allocation5 + $0x38] sm:$0xff]  ;;  %v104_v26 = vld [vmem:[#allocation5 + $0xc8] sm:$0xff]  ;;  %v87_v30 = vld [vmem:[#allocation5 + $0x40] sm:$0xff]  ;;  %p1473_p13 = por %p1472_p12, %p1471_p11 }
  0x3e   :  { %v64_v27 = vld [vmem:[#allocation2 + $0x8] sm:$0xff]  ;;  %v1273_v28 = vpack.c.bf16 %v86_v24, %v85_v23  ;;  %v1275_v29 = vpack.c.bf16 %v104_v26, %v103_v25  ;;  %v105_v32 = vld [vmem:[#allocation5 + $0xd0] sm:$0xff]  ;;  %v106_v33 = vld [vmem:[#allocation5 + $0xd8] sm:$0xff] }
  0x3f   :  { %182 = vmatprep.mubr.f32.mxu0 %v64_v27  ;;  %v88_v31 = vld [vmem:[#allocation5 + $0x48] sm:$0xff]  ;;  %v59_v34 = vld [vmem:[#allocation7] sm:$0xff]  ;;  %v61_v38 = vld [vmem:[#allocation7 + $0x10] sm:$0xff]  ;;  %v1279_v39 = vpack.c.bf16 %v106_v33, %v105_v32  ;;  %p1474_p0 = pnand %p1473_p13, %p1467_p10 }
  0x40   :  { %1266 = vmatpush3.bf16.msra.mxu0 %v1265_v15  ;;  %v60_v35 = vld [vmem:[#allocation7 + $0x8] sm:$0xff]  ;;  %v1277_v36 = vpack.c.bf16 %v88_v31, %v87_v30  ;;  %v89_v40 = vld [vmem:[#allocation5 + $0x50] sm:$0xff]  ;;  %v90_v41 = vld [vmem:[#allocation5 + $0x58] sm:$0xff] }
  0x41   :  { %1268 = vmatprep.subr.bf16.mxu0 %v1267_v16  ;;  %v1577_v37 = vpack.c.bf16 %v60_v35, %v59_v34  ;;  %v62_v42 = vld [vmem:[#allocation7 + $0x18] sm:$0xff]  ;;  %v107_v43 = vld [vmem:[#allocation5 + $0xe0] sm:$0xff]  ;;  %v108_v44 = vld [vmem:[#allocation5 + $0xe8] sm:$0xff]  ;;  %v1281_v46 = vpack.c.bf16 %v90_v41, %v89_v40 }
  0x42   :  { %v1580_v45 = vpack.c.bf16 %v62_v42, %v61_v38  ;;  %v1283_v47 = vpack.c.bf16 %v108_v44, %v107_v43  ;;  %v91_v48 = vld [vmem:[#allocation5 + $0x60] sm:$0xff]  ;;  %v92_v49 = vld [vmem:[#allocation5 + $0x68] sm:$0xff]  ;;  %v109_v50 = vld [vmem:[#allocation5 + $0xf0] sm:$0xff] }
  0x43   :  { %1293 = vmatpush3.bf16.msra.mxu1 %v1577_v37  ;;  %v110_v51 = vld [vmem:[#allocation5 + $0xf8] sm:$0xff]  ;;  %v1285_v52 = vpack.c.bf16 %v92_v49, %v91_v48  ;;  %v93_v54 = vld [vmem:[#allocation5 + $0x70] sm:$0xff]  ;;  %v63_v57 = vld [vmem:[#allocation2] sm:$0xff] }
  0x44   :  { %1270 = vmatpush3.bf16.msra.mxu0 %v1269_v21  ;;  %1294 = vmatprep.subr.bf16.mxu1 %v1501_v0  ;;  %v1287_v53 = vpack.c.bf16 %v110_v51, %v109_v50  ;;  %v94_v55 = vld [vmem:[#allocation5 + $0x78] sm:$0xff]  ;;  %v65_v59 = vld [vmem:[#allocation2 + $0x10] sm:$0xff]  ;;  %v68_v60 = vld [vmem:[#allocation2 + $0x28] sm:$0xff] }
  0x45   :  { %1272 = vmatprep.subr.bf16.mxu0 %v1271_v22  ;;  %v1289_v56 = vpack.c.bf16 %v94_v55, %v93_v54  ;;  %v66_v58 = vld [vmem:[#allocation2 + $0x18] sm:$0xff]  ;;  %v67_v61 = vld [vmem:[#allocation2 + $0x20] sm:$0xff]  ;;  %v69_v63 = vld [vmem:[#allocation2 + $0x30] sm:$0xff] }
  0x46   :  { %v70_v62 = vld [vmem:[#allocation2 + $0x38] sm:$0xff]  ;;  %v72_v2 = vld [vmem:[#allocation2 + $0x48] sm:$0xff]  ;;  %v71_v3 = vld [vmem:[#allocation2 + $0x40] sm:$0xff] }
  0x47   :  { %1296 = vmatpush3.bf16.msra.mxu1 %v1580_v45  ;;  %v74_v4 = vld [vmem:[#allocation2 + $0x58] sm:$0xff]  ;;  %v73_v5 = vld [vmem:[#allocation2 + $0x50] sm:$0xff]  ;;  %v76_v6 = vld [vmem:[#allocation2 + $0x68] sm:$0xff] }
  0x48   :  { %1274 = vmatpush3.bf16.msra.mxu0 %v1273_v28  ;;  %1297 = vmatprep.subr.bf16.mxu1 %v1501_v0  ;;  %v75_v7 = vld [vmem:[#allocation2 + $0x60] sm:$0xff]  ;;  %v78_v8 = vld [vmem:[#allocation2 + $0x78] sm:$0xff]  ;;  %v77_v9 = vld [vmem:[#allocation2 + $0x70] sm:$0xff] }
  0x49   :  { %1276 = vmatprep.subr.bf16.mxu0 %v1275_v29  ;;  %v1051_v14 = vld [vmem:[%s1703_s3] ss:$0 sm:$0xff]  ;;  %s1504_s3 = smov 32  }
  0x4a   :  { %1180 = vmatmul.mubr.f32.vlgmr.msra.gmra.mrb[0].mxu1 %v1503_v1 }
  0x4b   :  { %1299 = vmatpush3.bf16.msra.mxu1 %v1577_v37  ;;  %1190 = vmatprep.mubr.msk.f32.mxu1 %vm1502_vm0, %v1503_v1 }
  0x4c   :  { %1278 = vmatpush3.bf16.msra.mxu0 %v1277_v36  ;;  %1300 = vmatprep.subr.bf16.mxu1 %v1501_v0 }
  0x4d   :  { %1280 = vmatprep.subr.bf16.mxu0 %v1279_v39 }
  0x4f   :  { %1302 = vmatpush3.bf16.msra.mxu1 %v1580_v45 }
  0x50   :  { %1282 = vmatpush3.bf16.msra.mxu0 %v1281_v46  ;;  %1303 = vmatprep.subr.bf16.mxu1 %v1501_v0 }
  0x51   :  { %1284 = vmatprep.subr.bf16.mxu0 %v1283_v47 }
  0x54   :  { %1286 = vmatpush3.bf16.msra.mxu0 %v1285_v52 }
  0x55   :  { %1288 = vmatprep.subr.bf16.mxu0 %v1287_v53 }
  0x58   :  { %1290 = vmatpush3.bf16.msra.mxu0 %v1289_v56 }
  0x59   :  { %1333 = vmatprep.subr.bf16.mxu0 %v1501_v0 }
  0x5b   :  { %183 = vmatmul.mubr.f32.vlgmr.msra.gmra.mrb[0].mxu0 %v63_v57 }
  0x5c   :  { %187 = vmatprep.mubr.f32.mxu0 %v66_v58  ;;  %1335 = vmatpush3.bf16.msra.mxu0 %v1577_v37 }
  0x5d   :  { %1336 = vmatprep.subr.bf16.mxu0 %v1501_v0 }
  0x5f   :  { %188 = vmatmul.mubr.f32.gmra.mrb[2].mxu0 %v65_v59 }
  0x60   :  { %192 = vmatprep.mubr.f32.mxu0 %v68_v60  ;;  %1338 = vmatpush3.bf16.msra.mxu0 %v1580_v45 }
  0x63   :  { %193 = vmatmul.mubr.f32.gmra.mrb[4].mxu0 %v67_v61 }
  0x64   :  { %197 = vmatprep.mubr.f32.mxu0 %v70_v62 }
  0x67   :  { %198 = vmatmul.mubr.f32.gmra.mrb[6].mxu0 %v69_v63 }
  0x68   :  { %202 = vmatprep.mubr.f32.mxu0 %v72_v2 }
  0x6b   :  { %203 = vmatmul.mubr.f32.gmra.mrb[8].mxu0 %v71_v3 }
  0x6c   :  { %207 = vmatprep.mubr.f32.mxu0 %v74_v4 }
  0x6f   :  { %208 = vmatmul.mubr.f32.gmra.mrb[10].mxu0 %v73_v5 }
  0x70   :  { %212 = vmatprep.mubr.f32.mxu0 %v76_v6 }
  0x73   :  { %213 = vmatmul.mubr.f32.gmra.mrb[12].mxu0 %v75_v7 }
  0x74   :  { %217 = vmatprep.mubr.f32.mxu0 %v78_v8 }
  0x77   :  { %218 = vmatmul.mubr.f32.gmra.mrb[14].mxu0 %v77_v9 }
  0x78   :  { %1256 = vmatprep.mubr.msk.f32.mxu0 %vm1502_vm0, %v1503_v1 }
 0x11d   :  { %v293_v10 = vpop.f32.mrb[0].mxu1 }
 0x11e   :  { %v1181_v11 = vpop.f32.mrb[1].mxu1 }
 0x12e   :  { %v1107_v12 = vpop.f32.mrb[0].mxu0 }
 0x12f   :  { %v1108_v13 = vpop.f32.mrb[1].mxu0 }
 0x130   :  { %v1109_v15 = vadd.f32 %v1108_v13, %v1107_v12 }
 0x132   :  { %v1110_v16 = vpop.f32.mrb[2].mxu0  ;;  %v1601_v17 = vadd.f32 %v1109_v15, %v1051_v14 }
 0x133   :  { %v1111_v18 = vpop.f32.mrb[3].mxu0 }
 0x134   :  { %v1112_v19 = vadd.f32 %v1111_v18, %v1110_v16 }
 0x136   :  { %v1113_v20 = vpop.f32.mrb[4].mxu0  ;;  %v1603_v21 = vadd.f32 %v1112_v19, %v1051_v14 }
 0x137   :  { %v1114_v22 = vpop.f32.mrb[5].mxu0 }
 0x138   :  { %v1115_v23 = vadd.f32 %v1114_v22, %v1113_v20 }
 0x13a   :  { %v1116_v24 = vpop.f32.mrb[6].mxu0  ;;  %v1605_v25 = vadd.f32 %v1115_v23, %v1051_v14 }
 0x13b   :  { %v1117_v26 = vpop.f32.mrb[7].mxu0 }
 0x13c   :  { %v1118_v27 = vadd.f32 %v1117_v26, %v1116_v24 }
 0x13e   :  { %v1119_v28 = vpop.f32.mrb[8].mxu0  ;;  %v1607_v29 = vadd.f32 %v1118_v27, %v1051_v14 }
 0x13f   :  { %v1120_v30 = vpop.f32.mrb[9].mxu0 }
 0x140   :  { %v1121_v31 = vadd.f32 %v1120_v30, %v1119_v28 }
 0x142   :  { %v1122_v32 = vpop.f32.mrb[10].mxu0  ;;  %v1609_v33 = vadd.f32 %v1121_v31, %v1051_v14 }
 0x143   :  { %v1123_v34 = vpop.f32.mrb[11].mxu0 }
 0x144   :  { %v1124_v35 = vadd.f32 %v1123_v34, %v1122_v32 }
 0x146   :  { %v1125_v36 = vpop.f32.mrb[12].mxu0  ;;  %v1611_v38 = vadd.f32 %v1124_v35, %v1051_v14 }
 0x147   :  { %v1126_v39 = vpop.f32.mrb[13].mxu0 }
 0x148   :  { %v1127_v40 = vadd.f32 %v1126_v39, %v1125_v36 }
 0x14a   :  { %v1128_v41 = vpop.f32.mrb[14].mxu0  ;;  %v215_v42 = vadd.f32 %v1127_v40, %v1051_v14 }
 0x14b   :  { %v1129_v43 = vpop.f32.mrb[15].mxu0 }
 0x14c   :  { %v1130_v44 = vadd.f32 %v1129_v43, %v1128_v41 }
 0x14e   :  { %v220_v46 = vadd.f32 %v1130_v44, %v1051_v14 }
 0x150   :  { %v297_v47 = vadd.f32 %v293_v10, %v220_v46 }
 0x152   :  { %v1052_v48 = vmul.f32 -1.442695, %v297_v47 }
 0x154   :  { %1352 = vpow2.f32 %v1052_v48 }
 0x15e   :  { %v1353_v49 = vpop.eup %1352 }
 0x15f   :  { %v301_v50 = vadd.f32 1.0, %v1353_v49 }
 0x161   :  { %1354 = vrcp.f32 %v301_v50 }
 0x16b   :  { %v1355_v51 = vpop.eup %1354 }
 0x16c   :  { %v304_v52 = vmul.f32 2.0, %v1355_v51  ;;  %v306_v56 = vmul.f32 0.0, %v1355_v51 }
 0x16e   :  { %v1053_v53 = vadd.f32 -1.0, %v304_v52 }
 0x170   :  { %308 = vrot.lane.b32.xlu0 %v1053_v53, %s1504_s3 }
 0x1e2   :  { %v309_v54 = vpop.permute.xlu0 %308 }
 0x1e3   :  { %v311_v55 = vmul.f32 %v1355_v51, %v309_v54 }
 0x1e5   :  { %313 = vrot.lane.b32.xlu0 %v311_v55, %s1504_s3 }
 0x257   :  { %v314_v57 = vpop.permute.xlu0 %313 }
 0x258   :  { %v316_v58 = vadd.f32 %v314_v57, %v306_v56 }
 0x25a   :  { %1356 = vtanh.f32 %v316_v58 }
 0x264   :  { %v1357_v59 = vpop.eup %1356 }
 0x265   :  { %319 = vrot.lane.b32.xlu1 %v1357_v59, %s1504_s3 }
 0x2d7   :  { %v320_v60 = vpop.permute.xlu1 %319 }
 0x2d8   :  { %v322_v61 = vmul.f32 %v1355_v51, %v320_v60 }
 0x2da   :  { %324 = vrot.lane.b32.xlu1 %v322_v61, %s1505_s26 }
 0x34c   :  { %v325_v62 = vpop.permute.xlu1 %324 }
 0x34d   :  { %1191 = vmatmul.mubr.msk.f32.vlgmr.msra.gmra.mrb[2].mxu1 %vm223_vm1, %v325_v62 }
 0x34e   :  { %1305 = vmatpush3.bf16.msra.mxu1 %v1577_v37  ;;  %1201 = vmatprep.mubr.msk.f32.mxu1 %vm1502_vm0, %v1503_v1 }
 0x34f   :  { %1306 = vmatprep.subr.bf16.mxu1 %v1501_v0 }
 0x352   :  { %1308 = vmatpush3.bf16.msra.mxu1 %v1580_v45 }
 0x353   :  { %1309 = vmatprep.subr.bf16.mxu1 %v1501_v0 }
 0x420   :  { %v394_v63 = vpop.f32.mrb[2].mxu1 }
 0x421   :  { %v398_v2 = vadd.f32 %v394_v63, %v215_v42  ;;  %v1192_v3 = vpop.f32.mrb[3].mxu1 }
 0x423   :  { %v1055_v4 = vmul.f32 -1.442695, %v398_v2 }
 0x425   :  { %1358 = vpow2.f32 %v1055_v4 }
 0x42f   :  { %v1359_v5 = vpop.eup %1358 }
 0x430   :  { %v402_v6 = vadd.f32 1.0, %v1359_v5 }
 0x432   :  { %1360 = vrcp.f32 %v402_v6 }
 0x43c   :  { %v1361_v7 = vpop.eup %1360 }
 0x43d   :  { %v405_v8 = vmul.f32 2.0, %v1361_v7  ;;  %v407_v12 = vmul.f32 %v1361_v7, %v316_v58 }
 0x43f   :  { %v1056_v9 = vadd.f32 -1.0, %v405_v8 }
 0x441   :  { %409 = vrot.lane.b32.xlu0 %v1056_v9, %s1504_s3 }
 0x4b3   :  { %v410_v10 = vpop.permute.xlu0 %409 }
 0x4b4   :  { %v412_v11 = vmul.f32 %v1361_v7, %v410_v10 }
 0x4b6   :  { %414 = vrot.lane.b32.xlu1 %v412_v11, %s1504_s3 }
 0x528   :  { %v415_v13 = vpop.permute.xlu1 %414 }
 0x529   :  { %v417_v14 = vadd.f32 %v415_v13, %v407_v12 }
 0x52b   :  { %1362 = vtanh.f32 %v417_v14 }
 0x535   :  { %v1363_v15 = vpop.eup %1362 }
 0x536   :  { %420 = vrot.lane.b32.xlu0 %v1363_v15, %s1504_s3 }
 0x5a8   :  { %v421_v16 = vpop.permute.xlu0 %420 }
 0x5a9   :  { %v423_v18 = vmul.f32 %v1361_v7, %v421_v16 }
 0x5ab   :  { %425 = vrot.lane.b32.xlu1 %v423_v18, %s1505_s26 }
 0x61d   :  { %v426_v19 = vpop.permute.xlu1 %425 }
 0x61e   :  { %1202 = vmatmul.mubr.msk.f32.vlgmr.msra.gmra.mrb[4].mxu1 %vm223_vm1, %v426_v19 }
 0x61f   :  { %1311 = vmatpush3.bf16.msra.mxu1 %v1577_v37  ;;  %1212 = vmatprep.mubr.msk.f32.mxu1 %vm1502_vm0, %v1503_v1 }
 0x620   :  { %1312 = vmatprep.subr.bf16.mxu1 %v1501_v0 }
 0x623   :  { %1314 = vmatpush3.bf16.msra.mxu1 %v1580_v45 }
 0x624   :  { %1315 = vmatprep.subr.bf16.mxu1 %v1501_v0 }
 0x6f1   :  { %v495_v20 = vpop.f32.mrb[4].mxu1 }
 0x6f2   :  { %v499_v22 = vadd.f32 %v495_v20, %v1611_v38  ;;  %v1203_v23 = vpop.f32.mrb[5].mxu1 }
 0x6f4   :  { %v1058_v24 = vmul.f32 -1.442695, %v499_v22 }
 0x6f6   :  { %1364 = vpow2.f32 %v1058_v24 }
 0x700   :  { %v1365_v26 = vpop.eup %1364 }
 0x701   :  { %v503_v27 = vadd.f32 1.0, %v1365_v26 }
 0x703   :  { %1366 = vrcp.f32 %v503_v27 }
 0x70d   :  { %v1367_v28 = vpop.eup %1366 }
 0x70e   :  { %v506_v30 = vmul.f32 2.0, %v1367_v28  ;;  %v508_v35 = vmul.f32 %v1367_v28, %v417_v14 }
 0x710   :  { %v1059_v31 = vadd.f32 -1.0, %v506_v30 }
 0x712   :  { %510 = vrot.lane.b32.xlu0 %v1059_v31, %s1504_s3 }
 0x784   :  { %v511_v32 = vpop.permute.xlu0 %510 }
 0x785   :  { %v513_v34 = vmul.f32 %v1367_v28, %v511_v32 }
 0x787   :  { %515 = vrot.lane.b32.xlu1 %v513_v34, %s1504_s3 }
 0x7f9   :  { %v516_v36 = vpop.permute.xlu1 %515 }
 0x7fa   :  { %v518_v39 = vadd.f32 %v516_v36, %v508_v35 }
 0x7fc   :  { %1368 = vtanh.f32 %v518_v39 }
 0x806   :  { %v1369_v38 = vpop.eup %1368 }
 0x807   :  { %521 = vrot.lane.b32.xlu0 %v1369_v38, %s1504_s3 }
 0x879   :  { %v522_v40 = vpop.permute.xlu0 %521 }
 0x87a   :  { %v524_v41 = vmul.f32 %v1367_v28, %v522_v40 }
 0x87c   :  { %526 = vrot.lane.b32.xlu1 %v524_v41, %s1505_s26 }
 0x8ee   :  { %v527_v42 = vpop.permute.xlu1 %526 }
 0x8ef   :  { %1213 = vmatmul.mubr.msk.f32.vlgmr.msra.gmra.mrb[6].mxu1 %vm223_vm1, %v527_v42 }
 0x8f0   :  { %1317 = vmatpush3.bf16.msra.mxu1 %v1577_v37  ;;  %1223 = vmatprep.mubr.msk.f32.mxu1 %vm1502_vm0, %v1503_v1 }
 0x8f1   :  { %1318 = vmatprep.subr.bf16.mxu1 %v1501_v0 }
 0x8f4   :  { %1320 = vmatpush3.bf16.msra.mxu1 %v1580_v45 }
 0x8f5   :  { %1321 = vmatprep.subr.bf16.mxu1 %v1501_v0 }
 0x9c2   :  { %v596_v43 = vpop.f32.mrb[6].mxu1 }
 0x9c3   :  { %v600_v44 = vadd.f32 %v596_v43, %v1609_v33  ;;  %v1214_v46 = vpop.f32.mrb[7].mxu1 }
 0x9c5   :  { %v1061_v47 = vmul.f32 -1.442695, %v600_v44 }
 0x9c7   :  { %1370 = vpow2.f32 %v1061_v47 }
 0x9d1   :  { %v1371_v48 = vpop.eup %1370 }
 0x9d2   :  { %v604_v49 = vadd.f32 1.0, %v1371_v48 }
 0x9d4   :  { %1372 = vrcp.f32 %v604_v49 }
 0x9de   :  { %v1373_v50 = vpop.eup %1372 }
 0x9df   :  { %v607_v51 = vmul.f32 2.0, %v1373_v50  ;;  %v609_v55 = vmul.f32 %v1373_v50, %v518_v39 }
 0x9e1   :  { %v1062_v52 = vadd.f32 -1.0, %v607_v51 }
 0x9e3   :  { %611 = vrot.lane.b32.xlu0 %v1062_v52, %s1504_s3 }
 0xa55   :  { %v612_v53 = vpop.permute.xlu0 %611 }
 0xa56   :  { %v614_v54 = vmul.f32 %v1373_v50, %v612_v53 }
 0xa58   :  { %616 = vrot.lane.b32.xlu1 %v614_v54, %s1504_s3 }
 0xaca   :  { %v617_v56 = vpop.permute.xlu1 %616 }
 0xacb   :  { %v619_v57 = vadd.f32 %v617_v56, %v609_v55 }
 0xacd   :  { %1374 = vtanh.f32 %v619_v57 }
 0xad7   :  { %v1375_v33 = vpop.eup %1374 }
 0xad8   :  { %622 = vrot.lane.b32.xlu0 %v1375_v33, %s1504_s3 }
 0xb4a   :  { %v623_v58 = vpop.permute.xlu0 %622 }
 0xb4b   :  { %v625_v59 = vmul.f32 %v1373_v50, %v623_v58 }
 0xb4d   :  { %627 = vrot.lane.b32.xlu1 %v625_v59, %s1505_s26 }
 0xbbf   :  { %v628_v60 = vpop.permute.xlu1 %627 }
 0xbc0   :  { %1224 = vmatmul.mubr.msk.f32.vlgmr.msra.gmra.mrb[8].mxu1 %vm223_vm1, %v628_v60 }
 0xbc1   :  { %1323 = vmatpush3.bf16.msra.mxu1 %v1577_v37  ;;  %1234 = vmatprep.mubr.msk.f32.mxu1 %vm1502_vm0, %v1503_v1 }
 0xbc2   :  { %1324 = vmatprep.subr.bf16.mxu1 %v1501_v0 }
 0xbc5   :  { %1326 = vmatpush3.bf16.msra.mxu1 %v1580_v45 }
 0xbc6   :  { %1327 = vmatprep.subr.bf16.mxu1 %v1501_v0 }
 0xc93   :  { %v697_v61 = vpop.f32.mrb[8].mxu1 }
 0xc94   :  { %v701_v62 = vadd.f32 %v697_v61, %v1607_v29  ;;  %v1225_v63 = vpop.f32.mrb[9].mxu1 }
 0xc96   :  { %v1064_v2 = vmul.f32 -1.442695, %v701_v62 }
 0xc98   :  { %1376 = vpow2.f32 %v1064_v2 }
 0xca2   :  { %v1377_v3 = vpop.eup %1376 }
 0xca3   :  { %v705_v4 = vadd.f32 1.0, %v1377_v3 }
 0xca5   :  { %1378 = vrcp.f32 %v705_v4 }
 0xcaf   :  { %v1379_v5 = vpop.eup %1378 }
 0xcb0   :  { %v708_v6 = vmul.f32 2.0, %v1379_v5  ;;  %v710_v10 = vmul.f32 %v1379_v5, %v619_v57 }
 0xcb2   :  { %v1065_v7 = vadd.f32 -1.0, %v708_v6 }
 0xcb4   :  { %712 = vrot.lane.b32.xlu0 %v1065_v7, %s1504_s3 }
 0xd26   :  { %v713_v8 = vpop.permute.xlu0 %712 }
 0xd27   :  { %v715_v9 = vmul.f32 %v1379_v5, %v713_v8 }
 0xd29   :  { %717 = vrot.lane.b32.xlu1 %v715_v9, %s1504_s3 }
 0xd9b   :  { %v718_v11 = vpop.permute.xlu1 %717 }
 0xd9c   :  { %v720_v12 = vadd.f32 %v718_v11, %v710_v10 }
 0xd9e   :  { %1380 = vtanh.f32 %v720_v12 }
 0xda8   :  { %v1381_v29 = vpop.eup %1380 }
 0xda9   :  { %723 = vrot.lane.b32.xlu0 %v1381_v29, %s1504_s3 }
 0xe1b   :  { %v724_v13 = vpop.permute.xlu0 %723 }
 0xe1c   :  { %v726_v14 = vmul.f32 %v1379_v5, %v724_v13 }
 0xe1e   :  { %728 = vrot.lane.b32.xlu1 %v726_v14, %s1505_s26 }
 0xe90   :  { %v729_v15 = vpop.permute.xlu1 %728 }
 0xe91   :  { %1235 = vmatmul.mubr.msk.f32.vlgmr.msra.gmra.mrb[10].mxu1 %vm223_vm1, %v729_v15 }
 0xe92   :  { %1329 = vmatpush3.bf16.msra.mxu1 %v1577_v37  ;;  %1245 = vmatprep.mubr.msk.f32.mxu1 %vm1502_vm0, %v1503_v1 }
 0xe93   :  { %1330 = vmatprep.subr.bf16.mxu1 %v1501_v0 }
 0xe96   :  { %1332 = vmatpush3.bf16.msra.mxu1 %v1580_v45 }
 0xf64   :  { %v798_v16 = vpop.f32.mrb[10].mxu1 }
 0xf65   :  { %v802_v18 = vadd.f32 %v798_v16, %v1605_v25  ;;  %v1236_v19 = vpop.f32.mrb[11].mxu1 }
 0xf67   :  { %v1067_v20 = vmul.f32 -1.442695, %v802_v18 }
 0xf69   :  { %1382 = vpow2.f32 %v1067_v20 }
 0xf73   :  { %v1383_v22 = vpop.eup %1382 }
 0xf74   :  { %v806_v23 = vadd.f32 1.0, %v1383_v22 }
 0xf76   :  { %1384 = vrcp.f32 %v806_v23 }
 0xf80   :  { %v1385_v24 = vpop.eup %1384 }
 0xf81   :  { %v809_v26 = vmul.f32 2.0, %v1385_v24  ;;  %v811_v0 = vmul.f32 %v1385_v24, %v720_v12 }
 0xf83   :  { %v1068_v27 = vadd.f32 -1.0, %v809_v26 }
 0xf85   :  { %813 = vrot.lane.b32.xlu0 %v1068_v27, %s1504_s3 }
 0xff7   :  { %v814_v37 = vpop.permute.xlu0 %813 }
 0xff8   :  { %v816_v1 = vmul.f32 %v1385_v24, %v814_v37 }
 0xffa   :  { %818 = vrot.lane.b32.xlu1 %v816_v1, %s1504_s3 }
0x106c   :  { %v819_v45 = vpop.permute.xlu1 %818 }
0x106d   :  { %v821_v28 = vadd.f32 %v819_v45, %v811_v0 }
0x106f   :  { %1386 = vtanh.f32 %v821_v28 }
0x1079   :  { %v1387_v25 = vpop.eup %1386 }
0x107a   :  { %824 = vrot.lane.b32.xlu0 %v1387_v25, %s1504_s3 }
0x10ec   :  { %v825_v30 = vpop.permute.xlu0 %824 }
0x10ed   :  { %v827_v31 = vmul.f32 %v1385_v24, %v825_v30 }
0x10ef   :  { %829 = vrot.lane.b32.xlu1 %v827_v31, %s1505_s26 }
0x1161   :  { %v830_v32 = vpop.permute.xlu1 %829 }
0x1162   :  { %1246 = vmatmul.mubr.msk.f32.vlgmr.msra.gmra.mrb[12].mxu1 %vm223_vm1, %v830_v32 }
0x1235   :  { %v899_v34 = vpop.f32.mrb[12].mxu1 }
0x1236   :  { %v903_v35 = vadd.f32 %v899_v34, %v1603_v21  ;;  %v1247_v36 = vpop.f32.mrb[13].mxu1 }
0x1238   :  { %v1070_v39 = vmul.f32 -1.442695, %v903_v35 }
0x123a   :  { %1388 = vpow2.f32 %v1070_v39 }
0x1244   :  { %v1389_v38 = vpop.eup %1388 }
0x1245   :  { %v907_v40 = vadd.f32 1.0, %v1389_v38 }
0x1247   :  { %1390 = vrcp.f32 %v907_v40 }
0x1251   :  { %v1391_v41 = vpop.eup %1390 }
0x1252   :  { %v910_v42 = vmul.f32 2.0, %v1391_v41  ;;  %v912_v47 = vmul.f32 %v1391_v41, %v821_v28 }
0x1254   :  { %v1071_v43 = vadd.f32 -1.0, %v910_v42 }
0x1256   :  { %914 = vrot.lane.b32.xlu0 %v1071_v43, %s1504_s3 }
0x12c8   :  { %v915_v44 = vpop.permute.xlu0 %914 }
0x12c9   :  { %v917_v46 = vmul.f32 %v1391_v41, %v915_v44 }
0x12cb   :  { %919 = vrot.lane.b32.xlu1 %v917_v46, %s1504_s3 }
0x133d   :  { %v920_v48 = vpop.permute.xlu1 %919 }
0x133e   :  { %v922_v49 = vadd.f32 %v920_v48, %v912_v47 }
0x1340   :  { %1392 = vtanh.f32 %v922_v49 }
0x134a   :  { %v1393_v21 = vpop.eup %1392 }
0x134b   :  { %925 = vrot.lane.b32.xlu0 %v1393_v21, %s1504_s3 }
0x13bd   :  { %v926_v50 = vpop.permute.xlu0 %925 }
0x13be   :  { %v928_v51 = vmul.f32 %v1391_v41, %v926_v50 }
0x13c0   :  { %930 = vrot.lane.b32.xlu1 %v928_v51, %s1505_s26 }
0x1432   :  { %v931_v52 = vpop.permute.xlu1 %930 }
0x1433   :  { %1257 = vmatmul.mubr.msk.f32.vlgmr.msra.gmra.mrb[16].mxu0 %vm223_vm1, %v931_v52 }
0x1506   :  { %v1000_v53 = vpop.f32.mrb[16].mxu0 }
0x1507   :  { %v1004_v54 = vadd.f32 %v1000_v53, %v1601_v17  ;;  %v1258_v55 = vpop.f32.mrb[17].mxu0 }
0x1509   :  { %v1073_v56 = vmul.f32 -1.442695, %v1004_v54 }
0x150b   :  { %1394 = vpow2.f32 %v1073_v56 }
0x1515   :  { %v1395_v57 = vpop.eup %1394 }
0x1516   :  { %v1008_v33 = vadd.f32 1.0, %v1395_v57 }
0x1518   :  { %1396 = vrcp.f32 %v1008_v33 }
0x1522   :  { %v1397_v58 = vpop.eup %1396 }
0x1523   :  { %v1011_v59 = vmul.f32 2.0, %v1397_v58  ;;  %v1013_v63 = vmul.f32 %v1397_v58, %v922_v49 }
0x1525   :  { %v1074_v60 = vadd.f32 -1.0, %v1011_v59 }
0x1527   :  { %1015 = vrot.lane.b32.xlu0 %v1074_v60, %s1504_s3 }
0x1599   :  { %v1016_v61 = vpop.permute.xlu0 %1015 }
0x159a   :  { %v1018_v62 = vmul.f32 %v1397_v58, %v1016_v61 }
0x159c   :  { %1020 = vrot.lane.b32.xlu1 %v1018_v62, %s1504_s3 }
0x160e   :  { %v1021_v2 = vpop.permute.xlu1 %1020 }
0x160f   :  { %v1023_v3 = vadd.f32 %v1021_v2, %v1013_v63 }
0x1611   :  { %1398 = vtanh.f32 %v1023_v3 }
0x161b   :  { %v1399_v17 = vpop.eup %1398 }
0x161c   :  { %1026 = vrot.lane.b32.xlu0 %v1399_v17, %s1504_s3 }
0x168e   :  { %v1027_v4 = vpop.permute.xlu0 %1026 }
0x168f   :  { %v1029_v5 = vmul.f32 %v1397_v58, %v1027_v4 }
0x1691   :  { %1031 = vrot.lane.b32.xlu1 %v1029_v5, %s1505_s26 }
0x1703   :  { %v1032_v6 = vpop.permute.xlu1 %1031 }
0x1704   :  { %1034 = vst.msk [vmem:[#allocation8] sm:$0xff] %vm223_vm1, %v1032_v6 }
0x1705   :  { %1477 = shalt.err (!%p1474_p0)
}
0x1706   :  { %s1478_s8 = scalar_lea.hbm %s1704_s4, 128 }
0x1707   :  { %p1479_p1 = scmp.ne.s32.totalorder %s1704_s4, %s1478_s8  ;;  %p1482_p2 = scmp.lt.u32.totalorder %s1478_s8, %s1704_s4 }
0x1709   :  { %p1484_p3 = pnand %p1482_p2, %p1479_p1 }
0x170b   :  { %1487 = shalt.err (!%p1484_p3)
}
0x170c   :  { %1044 = dma.vmem_to_hbm [thread:$0]  %s1042_s30, 128, %s1704_s4, [#allocation4]  }
0x170d   :  { %1492 = dma.done.wait [#allocation4], 128  }
0x170e   :  { %1493 = vsyncadd [#allocation4], 4294967168 }
0x170f   :  { %1048 = vsyncpa [#allocation3], 1 }
0x1710   :  { %1049 = vsyncpa [#allocation6], 1 }
0x1711   :  { %1050 = vsyncpa [#allocation4], 1 }

</bundles_post_ra>
